<compile_context>
chip_gen: v7x
topology: tpu7x:2x2x1
jax: 0.10.0
libtpu: 0.0.40
codegen_flags: <defaults>
</compile_context>

<pallas_src>
import math
import functools

import jax
import jax.numpy as jnp
from jax.experimental import pallas as pl
from jax.experimental.pallas import tpu as pltpu


# Row tiles: per input block (f32, lane-padded) ~1 MiB, x2 inputs x2 pipeline
# buffers ~4 MiB of VMEM -> safe under every generation's scoped default.
_ROW_TILE_ROWS = 1024    # for the (B, 136) layout (pads to 256 lanes)
_FLAT_TILE_ROWS = 2048   # for the lane-dense (N/128, 128) layout


def _wing_partial_rows_kernel(y_ref, yhat_ref, part_ref, *,
                              omega, inv_epsilon, c_const,
                              jaw_cols, tile_rows, n_rows):
    """(tile_rows, 136) blocks; jaw mask on columns, ragged-row mask on rows."""
    i = pl.program_id(0)
    a = y_ref[...].astype(jnp.float32)          # in-kernel widening cast
    b = yhat_ref[...].astype(jnp.float32)
    d = jnp.abs(a - b)

    col = jax.lax.broadcasted_iota(jnp.int32, d.shape, 1)
    row = jax.lax.broadcasted_iota(jnp.int32, d.shape, 0) + i * tile_rows
    valid = jnp.logical_and(col >= jaw_cols, row < n_rows)
    # Masked lanes take the d<omega branch and contribute exactly 0.
    d = jnp.where(valid, d, 0.0)

    loss = jnp.where(d < omega, omega * jnp.log1p(d * inv_epsilon), d - c_const)
    part_ref[0, 0] = jnp.sum(loss)


def _wing_partial_flat_kernel(y_ref, yhat_ref, part_ref, *,
                              omega, inv_epsilon, c_const,
                              jaw_cols, row_width, tile_rows, n_elems):
    """Lane-dense (tile_rows, 128) blocks; jaw mask from the flat index."""
    i = pl.program_id(0)
    a = y_ref[...].astype(jnp.float32)          # in-kernel widening cast
    b = yhat_ref[...].astype(jnp.float32)
    d = jnp.abs(a - b)

    row = jax.lax.broadcasted_iota(jnp.int32, d.shape, 0) + i * tile_rows
    col = jax.lax.broadcasted_iota(jnp.int32, d.shape, 1)
    flat = row * d.shape[1] + col
    valid = jnp.logical_and((flat % row_width) >= jaw_cols, flat < n_elems)
    d = jnp.where(valid, d, 0.0)

    loss = jnp.where(d < omega, omega * jnp.log1p(d * inv_epsilon), d - c_const)
    part_ref[0, 0] = jnp.sum(loss)


def wing_loss(landmarks1, landmarks2, omega=10.0, epsilon=2.0):
    """Pallas-TPU WingLoss forward.  landmarks*: (B, 68, 2) float (any fp dtype)."""
    omega = float(omega)
    epsilon = float(epsilon)
    inv_epsilon = 1.0 / epsilon
    c_const = omega - omega * math.log(1.0 + omega / epsilon)

    B, P, D = landmarks1.shape
    assert landmarks2.shape == (B, P, D)
    row_width = P * D            # 136 for 68-point landmarks
    jaw_cols = 17 * D            # 34 leading xy columns excluded
    n_valid = B * (P - 17) * D   # static element count entering the mean
    n_total = B * row_width
    elt_bytes = jnp.dtype(landmarks1.dtype).itemsize

    # Lane-dense layout whenever the flattened element count divides by 128
    # (e.g. B a multiple of 16 for 68-point landmarks); contiguous reshape is
    # zero-copy either way, and the cast to f32 happens in-kernel.
    use_flat = (n_total % 128) == 0

    if use_flat:
        rows, width = n_total // 128, 128
        tile = rows if rows <= _FLAT_TILE_ROWS else _FLAT_TILE_ROWS
        kernel = functools.partial(
            _wing_partial_flat_kernel,
            omega=omega, inv_epsilon=inv_epsilon, c_const=c_const,
            jaw_cols=jaw_cols, row_width=row_width,
            tile_rows=tile, n_elems=n_total)
    else:
        rows, width = B, row_width
        tile = rows if rows <= _ROW_TILE_ROWS else _ROW_TILE_ROWS
        kernel = functools.partial(
            _wing_partial_rows_kernel,
            omega=omega, inv_epsilon=inv_epsilon, c_const=c_const,
            jaw_cols=jaw_cols, tile_rows=tile, n_rows=B)

    y = landmarks1.reshape(rows, width)       # zero-copy, native dtype
    y_hat = landmarks2.reshape(rows, width)

    num_blocks = pl.cdiv(rows, tile)

    cost = pl.CostEstimate(
        flops=10 * n_total,
        transcendentals=n_total,
        bytes_accessed=2 * n_total * elt_bytes + num_blocks * 4,
    )

    partials = pl.pallas_call(
        kernel,
        out_shape=jax.ShapeDtypeStruct((num_blocks, 1), jnp.float32),
        grid=(num_blocks,),
        in_specs=[
            pl.BlockSpec((tile, width), lambda i: (i, 0)),
            pl.BlockSpec((tile, width), lambda i: (i, 0)),
        ],
        out_specs=pl.BlockSpec((1, 1), lambda i: (i, 0),
                               memory_space=pltpu.MemorySpace.SMEM),
        compiler_params=pltpu.CompilerParams(
            dimension_semantics=("parallel",)),
        cost_estimate=cost,
    )(y, y_hat)

    # Tiny final reduce over per-block partials (also sharded-friendly on v7x).
    return jnp.sum(partials) / jnp.float32(n_valid)


def _reference_wing_loss(landmarks1, landmarks2, omega=10.0, epsilon=2.0):
    """Pure-JAX reference mirroring the PyTorch module (computed in f32)."""
    c_const = omega - omega * math.log(1.0 + omega / epsilon)
    y = landmarks1[:, 17:].reshape(-1, 2).astype(jnp.float32)
    y_hat = landmarks2[:, 17:].reshape(-1, 2).astype(jnp.float32)
    d = jnp.abs(y - y_hat)
    loss = jnp.where(d < omega, omega * jnp.log1p(d / epsilon), d - c_const)
    return jnp.sum(loss) / d.size


if __name__ == "__main__":
    key = jax.random.PRNGKey(0)
    k1, k2, k3, k4 = jax.random.split(key, 4)

    # Small case (B=2): exercises the (B, 136) row-layout path.
    l1 = jax.random.uniform(k1, (2, 68, 2), jnp.float32) * 64.0
    l2 = jax.random.uniform(k2, (2, 68, 2), jnp.float32) * 64.0
    out = jax.block_until_ready(wing_loss(l1, l2))
    ref = _reference_wing_loss(l1, l2)
    assert jnp.allclose(out, ref, rtol=1e-5, atol=1e-4), (out, ref)

    # Slightly larger case (B=32): exercises the lane-dense flat path.
    l3 = jax.random.uniform(k3, (32, 68, 2), jnp.float32) * 64.0
    l4 = jax.random.uniform(k4, (32, 68, 2), jnp.float32) * 64.0
    out2 = jax.block_until_ready(wing_loss(l3, l4))
    ref2 = _reference_wing_loss(l3, l4)
    assert jnp.allclose(out2, ref2, rtol=1e-5, atol=1e-4), (out2, ref2)

    print("KERNEL_OK")
</pallas_src>

<mosaic_0001>
module attributes {stable_mosaic.version = 11 : i64} {
  func.func @_wing_partial_rows_kernel(%arg0: i32, %arg1: memref<2x136xf32, #tpu.memory_space<vmem>>, %arg2: memref<2x136xf32, #tpu.memory_space<vmem>>, %arg3: memref<1x1xf32, #tpu.memory_space<smem>>) attributes {dimension_semantics = [#tpu.dimension_semantics<parallel>], iteration_bounds = array<i64: 1>, scalar_prefetch = 0 : i64, scratch_operands = 0 : i64, tpu.core_type = #tpu.core_type<tc>, window_params = [{transform_indices = @transform_0, window_bounds = array<i64: 2, 136>}, {transform_indices = @transform_1, window_bounds = array<i64: 2, 136>}, {transform_indices = @transform_2, window_bounds = array<i64: 1, 1>}]} {
    %c0 = arith.constant 0 : index
    %c0_0 = arith.constant 0 : index
    %0 = vector.load %arg1[%c0, %c0_0] : memref<2x136xf32, #tpu.memory_space<vmem>>, vector<2x136xf32>
    %c0_1 = arith.constant 0 : index
    %c0_2 = arith.constant 0 : index
    %1 = vector.load %arg2[%c0_1, %c0_2] : memref<2x136xf32, #tpu.memory_space<vmem>>, vector<2x136xf32>
    %2 = arith.subf %0, %1 : vector<2x136xf32>
    %3 = math.absf %2 : vector<2x136xf32>
    %4 = tpu.iota {dimensions = array<i32: 1>} : vector<2x136xi32>
    %5 = tpu.iota {dimensions = array<i32: 0>} : vector<2x136xi32>
    %c2_i32 = arith.constant 2 : i32
    %6 = arith.muli %arg0, %c2_i32 : i32
    %7 = vector.broadcast %6 : i32 to vector<2x136xi32>
    %8 = arith.addi %5, %7 : vector<2x136xi32>
    %c34_i32 = arith.constant 34 : i32
    %9 = vector.broadcast %c34_i32 : i32 to vector<2x136xi32>
    %10 = arith.cmpi sge, %4, %9 : vector<2x136xi32>
    %c2_i32_3 = arith.constant 2 : i32
    %11 = vector.broadcast %c2_i32_3 : i32 to vector<2x136xi32>
    %12 = arith.cmpi slt, %8, %11 : vector<2x136xi32>
    %13 = arith.andi %10, %12 : vector<2x136xi1>
    %cst = arith.constant 0.000000e+00 : f32
    %14 = vector.broadcast %cst : f32 to vector<2x136xf32>
    %15 = arith.select %13, %3, %14 : vector<2x136xi1>, vector<2x136xf32>
    %cst_4 = arith.constant 1.000000e+01 : f32
    %16 = vector.broadcast %cst_4 : f32 to vector<2x136xf32>
    %17 = arith.cmpf olt, %15, %16 : vector<2x136xf32>
    %cst_5 = arith.constant 5.000000e-01 : f32
    %18 = vector.broadcast %cst_5 : f32 to vector<2x136xf32>
    %19 = arith.mulf %15, %18 : vector<2x136xf32>
    %20 = math.log1p %19 : vector<2x136xf32>
    %cst_6 = arith.constant 1.000000e+01 : f32
    %21 = vector.broadcast %cst_6 : f32 to vector<2x136xf32>
    %22 = arith.mulf %21, %20 : vector<2x136xf32>
    %cst_7 = arith.constant -7.9175949 : f32
    %23 = vector.broadcast %cst_7 : f32 to vector<2x136xf32>
    %24 = arith.subf %15, %23 : vector<2x136xf32>
    %25 = arith.select %17, %22, %24 : vector<2x136xi1>, vector<2x136xf32>
    %26 = vector.shape_cast %25 : vector<2x136xf32> to vector<1x2x136xf32>
    %cst_8 = arith.constant dense<0.000000e+00> : vector<1xf32>
    %27 = vector.multi_reduction <add>, %26, %cst_8 [1, 2] : vector<1x2x136xf32> to vector<1xf32>
    %28 = vector.shape_cast %27 : vector<1xf32> to vector<1x1x1xf32>
    %29 = vector.extract %28[0, 0, 0] : f32 from vector<1x1x1xf32>
    %c0_9 = arith.constant 0 : index
    %c0_10 = arith.constant 0 : index
    %30 = memref.load %arg3[%c0_9, %c0_10] : memref<1x1xf32, #tpu.memory_space<smem>>
    memref.store %29, %arg3[%c0_9, %c0_10] : memref<1x1xf32, #tpu.memory_space<smem>>
    return
  }
  func.func @transform_0(%arg0: i32) -> (i32, i32) {
    %c0_i32 = arith.constant 0 : i32
    %c0_i32_0 = arith.constant 0 : i32
    return %arg0, %c0_i32 : i32, i32
  }
  func.func @transform_1(%arg0: i32) -> (i32, i32) {
    %c0_i32 = arith.constant 0 : i32
    %c0_i32_0 = arith.constant 0 : i32
    return %arg0, %c0_i32 : i32, i32
  }
  func.func @transform_2(%arg0: i32) -> (i32, i32) {
    %c0_i32 = arith.constant 0 : i32
    %c0_i32_0 = arith.constant 0 : i32
    return %arg0, %c0_i32 : i32, i32
  }
}

</mosaic_0001>

<bundles_post_ra>
// kernel: tpu_custom_call.1
= control target key start
LH: loop header
LB: loop body
LE: loop exit
PB: predicated region body
PF: predicated region fallthrough
CT: control target
= control target key end

     0   :  { %7 = vsyncpa [#allocation3], 0  ;;  %s252_s0 = inlined_call_operand.hbm [shape: f32[2,136], index: 0, kind: input, shape index: {}]   ;;  %s253_s1 = inlined_call_operand.hbm [shape: f32[2,136], index: 1, kind: input, shape index: {}]   ;;  %s254_s2 = inlined_call_operand.hbm [shape: f32[1,1], index: 2, kind: output, shape index: {}]  }
   0x1   :  { %8 = vsyncpa [#allocation6], 0 }
   0x2   :  { %9 = vsyncpa [#allocation4], 0  ;;  %s197_s9 = smov [#allocation2]   ;;  %s198_s11 = smov [#allocation5]  }
   0x3   :  { %s16_s10 = sshll.u32 %s197_s9, 4  ;;  %s26_s12 = sshll.u32 %s198_s11, 4  ;;  %s17_s10 = int_to_ptr.vmem [resolvable:$true] %s16_s10  ;;  %s27_s12 = int_to_ptr.vmem [resolvable:$true] %s26_s12 }
   0x4   :  { %s137_s15 = scalar_lea.hbm %s252_s0, 64 }
   0x5   :  { %p138_p0 = scmp.ne.s32.totalorder %s252_s0, %s137_s15  ;;  %p141_p1 = scmp.lt.u32.totalorder %s137_s15, %s252_s0 }
   0x7   :  { %p143_p2 = pnand %p141_p1, %p138_p0 }
   0x9   :  { %146 = shalt.err (!%p143_p2)
}
   0xa   :  { %s147_s20 = scalar_lea.vmem %s17_s10, 64  ;;  %p152_p4 = scmp.lt.s32.totalorder %s17_s10, %s17_s10 }
   0xb   :  { %p148_p3 = scmp.ne.s32.totalorder %s17_s10, %s147_s20  ;;  %p153_p5 = scmp.lt.s32.totalorder %s147_s20, %s147_s20 }
   0xd   :  { %p154_p6 = por %p153_p5, %p152_p4 }
   0xf   :  { %p155_p7 = pnand %p154_p6, %p148_p3 }
  0x11   :  { %158 = shalt.err (!%p155_p7)
}
  0x12   :  { %19 = dma.hbm_to_vmem [thread:$0]  %s252_s0, 64, %s17_s10, [#allocation3]  }
  0x13   :  { %s159_s25 = scalar_lea.hbm %s253_s1, 64 }
  0x14   :  { %p160_p8 = scmp.ne.s32.totalorder %s253_s1, %s159_s25  ;;  %p163_p9 = scmp.lt.u32.totalorder %s159_s25, %s253_s1 }
  0x16   :  { %p165_p10 = pnand %p163_p9, %p160_p8 }
  0x18   :  { %168 = shalt.err (!%p165_p10)
}
  0x19   :  { %s169_s30 = scalar_lea.vmem %s27_s12, 64  ;;  %p174_p12 = scmp.lt.s32.totalorder %s27_s12, %s27_s12 }
  0x1a   :  { %p170_p11 = scmp.ne.s32.totalorder %s27_s12, %s169_s30  ;;  %p175_p13 = scmp.lt.s32.totalorder %s169_s30, %s169_s30 }
  0x1c   :  { %p176_p0 = por %p175_p13, %p174_p12 }
  0x1e   :  { %p177_p1 = pnand %p176_p0, %p170_p11 }
  0x20   :  { %180 = shalt.err (!%p177_p1)
}
  0x21   :  { %29 = dma.hbm_to_vmem [thread:$0]  %s253_s1, 64, %s27_s12, [#allocation6]  }
  0x22   :  { %191 = dma.done.wait [#allocation3], 64  }
  0x23   :  { %192 = vsyncadd [#allocation3], 4294967232 }
  0x24   :  { %193 = dma.done.wait [#allocation6], 64  }
  0x25   :  { %194 = vsyncadd [#allocation6], 4294967232  ;;  %v40_v0 = vlaneseq  ;;  %v199_v1 = vmov 1983009808   ;;  %v36_v6 = vld [vmem:[#allocation2] sm:$0xf] }
  0x26   :  { %v55_v2 = vunpack.c.l.s4 %v199_v1  ;;  %v37_v7 = vld [vmem:[#allocation5] sm:$0xf]  ;;  %vm94_vm6 = vcmask 1041408   ;;  %vm96_vm8 = vcmask 58368   ;;  %s181_s6 = scalar_lea.hbm %s254_s2, 16 }
  0x27   :  { %v41_v3 = vand.u32 127, %v40_v0  ;;  %v44_v4 = vshrl.u32 %v40_v0, 7  ;;  %v38_v8 = vsub.f32 %v36_v6, %v37_v7  ;;  %p182_p2 = scmp.ne.s32.totalorder %s254_s2, %s181_s6  ;;  %p185_p3 = scmp.lt.u32.totalorder %s181_s6, %s254_s2 }
  0x28   :  { %v56_v5 = vunpack.c.0.s8 %v55_v2 }
  0x29   :  { %vm48_vm0 = vcmp.ge.s32.totalorder %v41_v3, 34  ;;  %vm50_vm1 = vcmp.lt.s32.totalorder %v44_v4, 2  ;;  %v39_v10 = vand.u32 2147483647, %v38_v8  ;;  %p187_p4 = pnand %p185_p3, %p182_p2 }
  0x2a   :  { %v59_v9 = vsub.s32 %v56_v5, %v44_v4  ;;  %vm51_vm2 = vmand %vm48_vm0, %vm50_vm1 }
  0x2c   :  { %v60_v11 = vrot.slane %v39_v10, %v59_v9 }
  0x2e   :  { %v61_v12 = vcombine.high %v60_v11, %v60_v11  ;;  %v64_v13 = vsel %vm51_vm2, %v60_v11, 0.0 }
  0x2f   :  { %v68_v14 = vmul.f32 0.5, %v64_v13  ;;  %v125_v30 = vadd.f32 7.917595, %v64_v13  ;;  %vm66_vm5 = vcmp.lt.f32.partialorder %v64_v13, 10.0 }
  0x30   :  { %v65_v15 = vsel %vm50_vm1, %v61_v12, 0.0 }
  0x31   :  { %v69_v16 = vmul.f32 0.5, %v65_v15  ;;  %v70_v17 = vadd.f32 1.0, %v68_v14  ;;  %v73_v19 = vmul.f32 -0.5, %v68_v14  ;;  %v76_v22 = vand.u32 2147483647, %v68_v14 }
  0x32   :  { %v126_v34 = vadd.f32 7.917595, %v65_v15  ;;  %vm67_vm7 = vcmp.lt.f32.partialorder %v65_v15, 10.0 }
  0x33   :  { %133 = vlog2.f32 %v70_v17  ;;  %v79_v18 = vadd.f32 1.0, %v69_v16  ;;  %v82_v20 = vmul.f32 -0.5, %v69_v16  ;;  %v74_v21 = vadd.f32 1.0, %v73_v19 }
  0x34   :  { %v85_v24 = vand.u32 2147483647, %v69_v16  ;;  %vm77_vm3 = vcmp.lt.f32.partialorder %v76_v22, 0.0004427343 }
  0x35   :  { %135 = vlog2.f32 %v79_v18  ;;  %v83_v23 = vadd.f32 1.0, %v82_v20  ;;  %v75_v25 = vmul.f32 %v74_v21, %v68_v14 }
  0x36   :  { %vm86_vm4 = vcmp.lt.f32.partialorder %v85_v24, 0.0004427343 }
  0x37   :  { %v84_v28 = vmul.f32 %v83_v23, %v69_v16 }
  0x3d   :  { %v134_v26 = vpop.eup %133 }
  0x3e   :  { %v72_v27 = vmul.f32 0.6931472, %v134_v26 }
  0x3f   :  { %v136_v29 = vpop.eup %135 }
  0x40   :  { %v78_v31 = vsel %vm77_vm3, %v75_v25, %v72_v27  ;;  %v81_v32 = vmul.f32 0.6931472, %v136_v29 }
  0x41   :  { %v88_v33 = vmul.f32 10.0, %v78_v31 }
  0x42   :  { %v87_v35 = vsel %vm86_vm4, %v84_v28, %v81_v32 }
  0x43   :  { %v89_v36 = vmul.f32 10.0, %v87_v35  ;;  %v92_v37 = vsel %vm66_vm5, %v88_v33, %v125_v30 }
  0x44   :  { %v95_v38 = vsel %vm94_vm6, %v92_v37, 0.0 }
  0x45   :  { %v93_v39 = vsel %vm67_vm7, %v89_v36, %v126_v34 }
  0x46   :  { %v97_v40 = vsel %vm96_vm8, %v93_v39, 0.0 }
  0x47   :  { %v98_v41 = vadd.f32 %v97_v40, %v95_v38 }
  0x49   :  { %99 = vadd.xlane.f32.xlu0 %v98_v41 }
  0xd6   :  { %v100_v42 = vpop.xlane.xlu0 %99 }
  0xd7   :  { %v101_v43 = vrot.slane %v100_v42, 4 }
  0xd9   :  { %v102_v44 = vadd.f32 %v101_v43, %v100_v42 }
  0xdb   :  { %v103_v45 = vrot.slane %v102_v44, 2 }
  0xdd   :  { %v104_v46 = vadd.f32 %v103_v45, %v102_v44 }
  0xdf   :  { %v105_v47 = vrot.slane %v104_v46, 1 }
  0xe1   :  { %v106_v48 = vadd.f32 %v105_v47, %v104_v46 }
  0xe3   :  { %127 = vpush %v106_v48 }
 0x114   :  { %s128_s1 = spop %127 }
 0x115   :  { %109 = sst [smem:[#allocation7]] %s128_s1 }
 0x116   :  { %190 = shalt.err (!%p187_p4)
}
 0x117   :  { %s200_s11 = smov [#allocation7]  }
 0x118   :  { %117 = dma.smem_to_hbm %s200_s11, 16, %s254_s2, [#allocation4]  }
 0x119   :  { %195 = dma.done.wait [#allocation4], 16  }
 0x11a   :  { %196 = vsyncadd [#allocation4], 4294967280 }
 0x11b   :  { %121 = sfence }
 0x11c   :  { %122 = vsyncpa [#allocation3], 1 }
 0x11d   :  { %123 = vsyncpa [#allocation6], 1 }
 0x11e   :  { %124 = vsyncpa [#allocation4], 1 }

</bundles_post_ra>
